<compile_context>
chip_gen: v6e
topology: v6e:2x2x1
jax: 0.10.0
libtpu: 0.0.40
codegen_flags: <defaults>
</compile_context>

<pallas_src>
import functools

import jax
import jax.numpy as jnp
from jax import lax
from jax.experimental import pallas as pl
from jax.experimental.pallas import tpu as pltpu

TEMP = 5.0


def _absolute_pool_kernel(t_ref, v_ref, o_ref, *, num_frames):
    # t_ref: (Ab, D)        text tile (small; re-fetched per inner A step)
    # v_ref: (Bb*V, D)      video tile, frames flattened onto rows
    # o_ref: (Ab, Bb, D)    pooled output tile, (A, B, D) layout, D lane-dense
    V = num_frames
    BbV, D = v_ref.shape
    Bb = BbV // V

    v = v_ref[...]                                           # native dtype -> MXU
    # Fold 1/temp into the small text operand (Ab*D elems) rather than the
    # (Bb*V, Ab) score matrix.
    t = t_ref[...] * jnp.asarray(1.0 / TEMP, dtype=t_ref.dtype)

    # Fused NT score matmul, "video-major" so the frame axis lands on
    # sublanes:  (Bb*V, D) . (Ab, D)^T -> (Bb*V, Ab), f32 accumulate.
    scores = lax.dot_general(
        v, t,
        dimension_numbers=(((1,), (1,)), ((), ())),
        preferred_element_type=jnp.float32,
    )

    # Free leading-dim split (tile-aligned when V % 8 == 0 / f32).  The whole
    # softmax over the frame axis runs vectorized on full-width vregs.
    s3 = scores.reshape(Bb, V, -1)                           # (Bb, V, Ab)
    m = jnp.max(s3, axis=1, keepdims=True)                   # (Bb, 1, Ab)
    p = jnp.exp(s3 - m)                                      # (Bb, V, Ab)
    denom = jnp.sum(p, axis=1, keepdims=True)                # (Bb, 1, Ab)
    w = p / denom                                            # exact normalizer

    # Pooling: one batched contraction over V (batch dim Bb):
    #   (Bb, V, Ab) x (Bb, V, D) -> (Bb, Ab, D)
    v3 = v.reshape(Bb, V, D)
    pooled = lax.dot_general(
        w.astype(v.dtype), v3,
        dimension_numbers=(((1,), (1,)), ((0,), (0,))),
        preferred_element_type=jnp.float32,
    )

    # Single relayout to the (A, B, D) orientation (b moves onto sublanes),
    # then one lane-dense store of the whole tile.
    o_ref[...] = jnp.transpose(pooled, (1, 0, 2)).astype(o_ref.dtype)


def _pick_block(n, target, align):
    """Largest multiple of `align` dividing `n` that is <= target, else n."""
    target = max(align, min(target, n))
    target -= target % align
    for cand in range(target, 0, -align):
        if n % cand == 0:
            return cand
    return n  # no aligned divisor: use the full dim (always layout-legal)


def _default_blocks(A, B, V, D, text_dtype, out_dtype):
    # a_block: <= 128 (bounds the score live range / VMEM), aligned for the
    # text dtype's sublane packing, and small enough that the A grid axis has
    # >= 2 blocks when possible (so both v7x TensorCores get work).
    a_align = 16 if jnp.dtype(text_dtype).itemsize < 4 else 8
    a_block = _pick_block(A, min(128, max(a_align, A // 2)), a_align)
    # b_block: aim for Bb*V >= 256 (fills the v6e/v7x MXU width on the fused
    # score matmul) but cap the output tile at ~2 MiB so double-buffered
    # in/out tiles stay well inside the default scoped VMEM on every gen.
    out_bytes = jnp.dtype(out_dtype).itemsize
    budget = max(8, (2 * 1024 * 1024) // max(1, a_block * D * out_bytes))
    target_b = max(8, min(pl.cdiv(256, V), budget))
    b_block = _pick_block(B, target_b, 8)
    return a_block, b_block


@functools.partial(jax.jit, static_argnames=("a_block", "b_block", "out_dtype"))
def absolute_pool(text_features, video_features, *, a_block=None, b_block=None,
                  out_dtype=None):
    A, D = text_features.shape
    B, V, Dv = video_features.shape
    if D != Dv:
        raise ValueError("embed_dim mismatch between text and video features")
    if out_dtype is None:
        out_dtype = jnp.result_type(text_features.dtype, video_features.dtype)

    da, db = _default_blocks(A, B, V, D, text_features.dtype, out_dtype)
    a_block = da if a_block is None else a_block
    b_block = db if b_block is None else b_block
    if A % a_block or B % b_block:
        raise ValueError("a_block / b_block must divide A / B (kernel has no "
                         "tail masking)")
    if (a_block % 8 and a_block != A) or (b_block % 8 and b_block != B):
        raise ValueError("blocks must be multiples of 8 or the full dim")

    # Flatten frames onto rows in HBM (free reshape) so the video block is a
    # plain sublane-aligned 2-D tile regardless of V / dtype packing.
    video2d = video_features.reshape(B * V, D)

    # bi outer (slow), ai inner (fast): the larger video tile is re-used
    # across all A tiles; only the small text tile is re-fetched per step.
    grid = (B // b_block, A // a_block)

    t_bytes = jnp.dtype(text_features.dtype).itemsize
    v_bytes = jnp.dtype(video_features.dtype).itemsize
    o_bytes = jnp.dtype(out_dtype).itemsize
    cost = pl.CostEstimate(
        flops=4 * A * B * V * D,                 # two contractions over D / V
        transcendentals=A * B * V,               # softmax exp
        bytes_accessed=(A * D * t_bytes * grid[0]        # text, once per B tile
                        + B * V * D * v_bytes            # video, once
                        + A * B * D * o_bytes),          # dominant output write
    )

    kernel = functools.partial(_absolute_pool_kernel, num_frames=V)
    return pl.pallas_call(
        kernel,
        out_shape=jax.ShapeDtypeStruct((A, B, D), out_dtype),
        grid_spec=pltpu.PrefetchScalarGridSpec(
            num_scalar_prefetch=0,
            grid=grid,
            in_specs=[
                # Text tile changes every (inner) A step — it is the small one.
                pl.BlockSpec((a_block, D), lambda bi, ai: (ai, 0)),
                # Video tile is constant across the inner A axis -> re-used.
                pl.BlockSpec((b_block * V, D), lambda bi, ai: (bi, 0)),
            ],
            out_specs=pl.BlockSpec((a_block, b_block, D),
                                   lambda bi, ai: (ai, bi, 0)),
        ),
        compiler_params=pltpu.CompilerParams(
            dimension_semantics=("parallel", "parallel")),
        cost_estimate=cost,
    )(text_features, video2d)


def absolute_pool_ref(text_features, video_features):
    w = jnp.einsum('ad,bvd->abv', text_features, video_features)
    w = jax.nn.softmax(w / TEMP, axis=-1)
    return jnp.einsum('abv,bvd->abd', w, video_features)


if __name__ == "__main__":
    key = jax.random.PRNGKey(0)
    k1, k2 = jax.random.split(key)

    # text batch A, video batch B, frames V, embed dim D (lane-dense: 128)
    A, B, V, D = 32, 16, 8, 128
    text = jax.random.normal(k1, (A, D), dtype=jnp.float32)
    video = jax.random.normal(k2, (B, V, D), dtype=jnp.float32)

    ref = absolute_pool_ref(text, video)

    # Force a 2x2 grid so the tiling / index maps are actually exercised.
    out = jax.block_until_ready(absolute_pool(text, video, a_block=16, b_block=8))
    assert out.shape == (A, B, D)
    assert jnp.allclose(out, ref, atol=2e-3, rtol=2e-3), (
        float(jnp.max(jnp.abs(out - ref))))

    # Also exercise the default block-size heuristics.
    out2 = jax.block_until_ready(absolute_pool(text, video))
    assert jnp.allclose(out2, ref, atol=2e-3, rtol=2e-3), (
        float(jnp.max(jnp.abs(out2 - ref))))

    print("KERNEL_OK")
</pallas_src>

<mosaic_0001>
module attributes {stable_mosaic.version = 11 : i64} {
  func.func @_absolute_pool_kernel(%arg0: i32, %arg1: i32, %arg2: memref<16x128xf32, #tpu.memory_space<vmem>>, %arg3: memref<64x128xf32, #tpu.memory_space<vmem>>, %arg4: memref<16x8x128xf32, #tpu.memory_space<vmem>>) attributes {dimension_semantics = [#tpu.dimension_semantics<parallel>, #tpu.dimension_semantics<parallel>], iteration_bounds = array<i64: 2, 2>, scalar_prefetch = 0 : i64, scratch_operands = 0 : i64, tpu.core_type = #tpu.core_type<tc>, window_params = [{transform_indices = @transform_0, window_bounds = array<i64: 16, 128>}, {transform_indices = @transform_1, window_bounds = array<i64: 64, 128>}, {transform_indices = @transform_2, window_bounds = array<i64: 16, 8, 128>}]} {
    %c0 = arith.constant 0 : index
    %c0_0 = arith.constant 0 : index
    %0 = vector.load %arg3[%c0, %c0_0] : memref<64x128xf32, #tpu.memory_space<vmem>>, vector<64x128xf32>
    %c0_1 = arith.constant 0 : index
    %c0_2 = arith.constant 0 : index
    %1 = vector.load %arg2[%c0_1, %c0_2] : memref<16x128xf32, #tpu.memory_space<vmem>>, vector<16x128xf32>
    %cst = arith.constant 2.000000e-01 : f32
    %2 = vector.broadcast %cst : f32 to vector<16x128xf32>
    %3 = arith.mulf %1, %2 : vector<16x128xf32>
    %cst_3 = arith.constant dense<0.000000e+00> : vector<64x16xf32>
    %4 = tpu.matmul %0, %3, %cst_3 {dimension_numbers = #tpu.dot_dimension_numbers<[1], [1], [0], [0], [0, 0, 1, 0], [], []>} : vector<64x128xf32>, vector<16x128xf32>, vector<64x16xf32> -> vector<64x16xf32>
    %5 = vector.shape_cast %4 : vector<64x16xf32> to vector<8x8x16xf32>
    %cst_4 = arith.constant dense<0xFF800000> : vector<8x16xf32>
    %6 = vector.multi_reduction <maximumf>, %5, %cst_4 [1] : vector<8x8x16xf32> to vector<8x16xf32>
    %7 = vector.shape_cast %6 : vector<8x16xf32> to vector<8x1x16xf32>
    %8 = vector.broadcast %7 : vector<8x1x16xf32> to vector<8x8x16xf32>
    %9 = arith.subf %5, %8 : vector<8x8x16xf32>
    %10 = math.exp %9 : vector<8x8x16xf32>
    %cst_5 = arith.constant dense<0.000000e+00> : vector<8x16xf32>
    %11 = vector.multi_reduction <add>, %10, %cst_5 [1] : vector<8x8x16xf32> to vector<8x16xf32>
    %12 = vector.shape_cast %11 : vector<8x16xf32> to vector<8x1x16xf32>
    %13 = vector.broadcast %12 : vector<8x1x16xf32> to vector<8x8x16xf32>
    %14 = arith.divf %10, %13 : vector<8x8x16xf32>
    %15 = vector.shape_cast %0 : vector<64x128xf32> to vector<8x8x128xf32>
    %cst_6 = arith.constant dense<0.000000e+00> : vector<8x16x128xf32>
    %16 = tpu.matmul %14, %15, %cst_6 {dimension_numbers = #tpu.dot_dimension_numbers<[1], [1], [2], [2], [0, 0, 0, 2, 1, 2], [0], [0]>} : vector<8x8x16xf32>, vector<8x8x128xf32>, vector<8x16x128xf32> -> vector<8x16x128xf32>
    %17 = tpu.transpose %16, [1, 0, 2] : vector<8x16x128xf32> -> vector<16x8x128xf32>
    %c0_7 = arith.constant 0 : index
    %c0_8 = arith.constant 0 : index
    %c0_9 = arith.constant 0 : index
    %18 = vector.load %arg4[%c0_7, %c0_8, %c0_9] : memref<16x8x128xf32, #tpu.memory_space<vmem>>, vector<16x8x128xf32>
    tpu.vector_store %arg4[%c0_7, %c0_8, %c0_9], %17 {strides = array<i32>} : memref<16x8x128xf32, #tpu.memory_space<vmem>>, vector<16x8x128xf32>,
    return
  }
  func.func @transform_0(%arg0: i32, %arg1: i32) -> (i32, i32) {
    %c0_i32 = arith.constant 0 : i32
    %c0_i32_0 = arith.constant 0 : i32
    return %arg1, %c0_i32 : i32, i32
  }
  func.func @transform_1(%arg0: i32, %arg1: i32) -> (i32, i32) {
    %c0_i32 = arith.constant 0 : i32
    %c0_i32_0 = arith.constant 0 : i32
    return %arg0, %c0_i32 : i32, i32
  }
  func.func @transform_2(%arg0: i32, %arg1: i32) -> (i32, i32, i32) {
    %c0_i32 = arith.constant 0 : i32
    %c0_i32_0 = arith.constant 0 : i32
    return %arg1, %arg0, %c0_i32 : i32, i32, i32
  }
}

</mosaic_0001>

<bundles_post_ra>
// kernel: absolute_pool.1
= control target key start
LH: loop header
LB: loop body
LE: loop exit
PB: predicated region body
PF: predicated region fallthrough
CT: control target
= control target key end

     0   :  { %s2776_s0 = inlined_call_operand.hbm [shape: f32[32,128], index: 0, kind: input, shape index: {}]   ;;  %s2777_s1 = inlined_call_operand.hbm [shape: f32[128,128], index: 1, kind: input, shape index: {}]   ;;  %s2778_s2 = inlined_call_operand.hbm [shape: f32[32,16,128], index: 2, kind: output, shape index: {}]  }
   0x1   :  { %2789 = sst [smem:[#allocation16_spill]] %s2776_s0 }
   0x2   :  { %2790 = sst [smem:[#allocation17_spill]] %s2777_s1 }
   0x3   :  { %7 = vsyncpa [#allocation3], 0 }
   0x4   :  { %9 = vsyncpa [#allocation3 + $0x1], 0 }
   0x5   :  { %10 = vsyncpa [#allocation6], 0 }
   0x6   :  { %12 = vsyncpa [#allocation6 + $0x1], 0 }
   0x7   :  { %13 = vsyncpa [#allocation4], 0 }
   0x8   :  { %15 = vsyncpa [#allocation4 + $0x1], 0  ;;  %s2338_s9 = smov 0   ;;  %s2340_s10 = smov 0  }
   0x9   :  { %s2342_s11 = smov 0   ;;  %s2344_s12 = smov 0  }
   0xa   :  { %s2346_s13 = smov 0   ;;  %s2348_s14 = smov 0  }
   0xb   :  { %s2350_s15 = smov 0   ;;  %s2352_s16 = smov 0  }
   0xc   :  { %s2354_s17 = smov 0   ;;  %s2356_s18 = smov 0  }
   0xd   :  { %s2358_s19 = smov 0   ;;  %s2360_s20 = smov 0  }
   0xe   :  { %s2362_s21 = smov 0   ;;  %s2364_s22 = smov 0  }
   0xf LB: > { %2791 = sst [smem:[#allocation11_spill]] %s2303_s20  ;;  %s30_s23 = sadd.s32 1, %s2303_s20  ;;  %s2311_s22 = sphi %s2364_s22, %s21_s22   ;;  %s2307_s21 = sphi %s2362_s21, %s2820_s21   ;;  %s2303_s20 = sphi %s2360_s20, %s2830_s20   ;;  %s2299_s19 = sphi %s2358_s19, %s2818_s19   ;;  %s2295_s18 = sphi %s2356_s18, %s2817_s18   ;;  %s2291_s17 = sphi %s2354_s17, %s2829_s17   ;;  %s2287_s16 = sphi %s2352_s16, %s2828_s16   ;;  %s2283_s15 = sphi %s2350_s15, %s2827_s15   ;;  %s2279_s14 = sphi %s2348_s14, %s2826_s14   ;;  %s2275_s13 = sphi %s2346_s13, %s2825_s13   ;;  %s2271_s12 = sphi %s2344_s12, %s2824_s12   ;;  %s2267_s11 = sphi %s2342_s11, %s2823_s11   ;;  %s2263_s10 = sphi %s2340_s10, %s2822_s10   ;;  %s2259_s9 = sphi %s2338_s9, %s2821_s9  }
  0x10   : > { %2792 = sst [smem:[#allocation12_spill]] %s2307_s21  ;;  %s2779_s24 = sadd.s32 4294967295, %s2311_s22  }
  0x11   : > { %p2408_p0 = scmp.ge.s32.totalorder %s30_s23, 2  ;;  %p47_p1 = scmp.ne.s32.totalorder %s2291_s17, %s2287_s16 }
  0x12   : > { %p2782_p2 = scmp.eq.s32.totalorder %s2311_s22, 0  ;;  %s40_s26 = sadd.s32 1, %s2291_s17 }
  0x13   : > { %s2832_s23 = smov (%p2408_p0, %s30_s23), 0  ;;  %p53_p3 = scmp.ne.s32.totalorder %s2287_s16, %s2283_s15 }
  0x14   : > { %2794 = sst [smem:[#allocation13_spill]] %s2832_s23  ;;  %s2423_s27 = ssub.s32 %s2303_s20, %s2832_s23 }
  0x15   : > { %p2427_p4 = scmp.eq.s32.totalorder %s2779_s24, 0  ;;  %p38_p5 = scmp.eq.s32.totalorder %s2423_s27, 0 }
  0x16   : > { %p49_p6 = por %p2782_p2, %p47_p1  ;;  %p2784_p8 = scmp.lt.s32.totalorder %s2311_s22, 4 }
  0x17   : > { %p2436_p7 = por %p2427_p4, %p53_p3  ;;  %s131_s3 = sand.u32 1, %s2291_s17  }
  0x18   : > { %s2441_s30 = scalar_select %p38_p5, %s2291_s17, %s40_s26  }
  0x19   : > { %s1811_s4 = sshll.u32 %s131_s3, 4  ;;  %s1843_s5 = sshll.u32 %s2303_s20, 8 }
  0x1a   : > { %2797 = sst [smem:[#allocation14_spill]] %s2441_s30  ;;  %s135_s15 = scalar_lea.vmem [#allocation2], %s1811_s4 }
  0x1b   : > { %s2798_s0 = sld [smem:[#allocation16_spill]]  ;;  %s142_s24 = sshll.u32 %s135_s15, 4  ;;  %s143_s24 = int_to_ptr.vmem [resolvable:$true] %s142_s24 }
  0x1c   : > { %p2451_p9 = pnand %p2784_p8, %p49_p6  ;;  %p1817_p10 = scmp.ge.s32.totalorder %s2311_s22, 1 }
  0x1d   : > { %s132_s26 = scalar_lea.sflag [#allocation3], %s131_s3  ;;  %s2120_s30 = scalar_lea.vmem %s143_s24, 256 }
  0x1e   : > { %p2109_p11 = pneg %p2451_p9  ;;  %p2121_p12 = scmp.ne.s32.totalorder %s143_s24, %s2120_s30 }
  0x1f   : > { %s2313_s20 = smov [#allocation2]  }
  0x20   : > { %p2123_p13 = pnand %p2121_p12, %p2109_p11  ;;  %s2125_s6 = sshll.u32 %s2313_s20, 4  ;;  %s2126_s6 = int_to_ptr.vmem [resolvable:$false] %s2125_s6 }
  0x21   : > { %s141_s8 = scalar_lea.hbm %s2798_s0, %s1843_s5  ;;  %s2127_s4 = scalar_lea.vmem %s2126_s6, 512 }
  0x22   : > { %p2124_p1 = pneg %p2123_p13  ;;  %p2128_p3 = scmp.lt.s32.totalorder %s143_s24, %s2126_s6 }
  0x23   : > { %p2129_p5 = scmp.lt.s32.totalorder %s2127_s4, %s2120_s30 }
  0x25   : > { %p2130_p2 = por %p2129_p5, %p2128_p3 }
  0x27   : > { %p2131_p6 = pnand %p2130_p2, %p2124_p1 }
  0x29   : > { %2134 = shalt.err (!%p2131_p6)
}
  0x2a   : > { %s2783_s5 = smov 128   ;;  %s2785_s20 = smov 8  }
  0x2b   : > { %1945 = dma.hbm_to_vmem [thread:$0]  (!%p2451_p9), %s141_s8, 256, %s143_s24, %s132_s26, %s2783_s5, %s2783_s5, %s2785_s20  }
  0x2c   : > { %s2800_s30 = sadd.s32 4294967295, %s2311_s22   ;;  %p171_p11 = scmp.lt.s32.totalorder %s2311_s22, 5 }
  0x2d   : > { %p2465_p2 = scmp.eq.s32.totalorder %s2800_s30, 3  ;;  %s33_s23 = sadd.s32 1, %s2307_s21 }
  0x2e   : > { %p2472_p12 = pnand %p1817_p10, %p171_p11  ;;  %s2834_s23 = smov (!%p2408_p0, %s33_s23), %s2307_s21 }
  0x2f   : > { %s1808_s24 = sadd.s32 4294967294, %s2311_s22   ;;  %s66_s8 = sadd.s32 1, %s2279_s14 }
  0x30   : > { %p35_p9 = scmp.ge.s32.totalorder %s2834_s23, 2  ;;  %p79_p13 = scmp.ne.s32.totalorder %s2275_s13, %s2271_s12 }
  0x31   : > { %p73_p1 = scmp.ne.s32.totalorder %s2279_s14, %s2275_s13  ;;  %s94_s15 = sadd.s32 1, %s2267_s11 }
  0x32   : > { %s2836_s23 = smov (%p35_p9, %s2834_s23), 0  ;;  %p2491_p10 = por %p79_p13, %p2427_p4 }
  0x33   : > { %2803 = sst [smem:[#allocation15_spill]] %s2836_s23  ;;  %p104_p0 = scmp.ne.s32.totalorder %s2267_s11, %s2263_s10 }
  0x34   : > { %s63_s26 = ssub.s32 %s2307_s21, %s2836_s23  ;;  %p110_p3 = scmp.ne.s32.totalorder %s2263_s10, %s2259_s9 }
  0x35   : > { %p64_p5 = scmp.eq.s32.totalorder %s63_s26, 0  ;;  %s91_s12 = sor.u32 %s63_s26, %s2423_s27 }
  0x36   : > { %p92_p6 = scmp.eq.s32.totalorder %s91_s12, 0  ;;  %p2504_p11 = por %p2465_p2, %p104_p0 }
  0x37   : > { %s2509_s4 = scalar_select %p64_p5, %s2279_s14, %s66_s8  }
  0x38   : > { %s2805_s6 = scalar_select %p2504_p11, 1, 0 }
  0x39   : > { %s2512_s28 = scalar_select %p92_p6, %s2267_s11, %s94_s15  }
  0x3a   : > { %p111_p4 = scmp.eq.s32.totalorder %s1808_s24, 3  ;;  %s152_s30 = sand.u32 1, %s2279_s14  }
  0x3b   : > { %p2806_p9 = scmp.eq.s32.totalorder %s2311_s22, 0  ;;  %s1814_s5 = sshll.u32 %s152_s30, 6 }
  0x3c   : > { %p2520_p8 = por %p111_p4, %p110_p3  ;;  %s1844_s27 = sshll.u32 %s2307_s21, 10 }
  0x3d   : > { %p75_p13 = por %p73_p1, %p2806_p9  ;;  %s156_s3 = scalar_lea.vmem [#allocation5], %s1814_s5 }
  0x3e   : > { %s2807_s20 = scalar_select %p2520_p8, 1, 0 }
  0x3f   : > { %s163_s26 = sshll.u32 %s156_s3, 4  ;;  %s2808_s1 = sld [smem:[#allocation17_spill]]  ;;  %s164_s26 = int_to_ptr.vmem [resolvable:$true] %s163_s26 }
  0x40   : > { %p2809_p2 = scmp.lt.s32.totalorder %s2311_s22, 4  ;;  %s153_s15 = scalar_lea.sflag [#allocation6], %s152_s30 }
  0x41   : > { %s2148_s23 = scalar_lea.vmem %s164_s26, 1024  ;;  %s2316_s5 = smov [#allocation5]  }
  0x42   : > { %p2530_p0 = pnand %p2809_p2, %p75_p13  ;;  %p2149_p3 = scmp.ne.s32.totalorder %s164_s26, %s2148_s23 }
  0x43   : > { %s2153_s3 = sshll.u32 %s2316_s5, 4  ;;  %s2154_s3 = int_to_ptr.vmem [resolvable:$false] %s2153_s3 }
  0x44   : > { %p2137_p1 = pneg %p2530_p0  ;;  %s2155_s21 = scalar_lea.vmem %s2154_s3, 2048 }
  0x45   : > { %s162_s8 = scalar_lea.hbm %s2808_s1, %s1844_s27  ;;  %p2156_p4 = scmp.lt.s32.totalorder %s164_s26, %s2154_s3 }
  0x46   : > { %p2151_p5 = pnand %p2149_p3, %p2137_p1  ;;  %p2157_p9 = scmp.lt.s32.totalorder %s2155_s21, %s2148_s23 }
  0x48   : > { %p2152_p6 = pneg %p2151_p5  ;;  %p2158_p8 = por %p2157_p9, %p2156_p4 }
  0x4a   : > { %p2159_p11 = pnand %p2158_p8, %p2152_p6 }
  0x4c   : > { %2162 = shalt.err (!%p2159_p11)
}
  0x4d   : > { %s2811_s0 = smov 8   ;;  %s2812_s27 = smov 128  }
  0x4e   : > { %1948 = dma.hbm_to_vmem [thread:$0]  (!%p2530_p0), %s162_s8, 1024, %s164_s26, %s153_s15, %s2812_s27, %s2812_s27, %s2811_s0  }
  0x4f   : > { %175 = sbr.rel (%p2472_p12) target bundleno = 737 (0x2e1), region = 28  ;;  %s177_s30 = sand.u32 (!%p2472_p12), 1, %s2287_s16  }
  0x50   : > { %s1818_s12 = sshll.u32 (!%p2472_p12), %s177_s30, 4  ;;  %s178_s5 = scalar_lea.sflag (!%p2472_p12), [#allocation3], %s177_s30 }
  0x51   : > { %s181_s1 = scalar_lea.vmem (!%p2472_p12), [#allocation2], %s1818_s12 }
  0x54   : > { %2246 = dma.done.wait (%p2436_p7), %s178_s5, 256  }
  0x55   : > { %2248 = vsyncadd (%p2436_p7), %s178_s5, 4294967040  ;;  %s186_s21 = sand.u32 1, %s2275_s13  }
  0x56   : > { %s1819_s23 = sshll.u32 %s186_s21, 6  ;;  %s187_s24 = scalar_lea.sflag [#allocation6], %s186_s21 }
  0x57   : > { %s190_s26 = scalar_lea.vmem [#allocation5], %s1819_s23 }
  0x58   : > { %2250 = dma.done.wait (%p2491_p10), %s187_s24, 1024  }
  0x59   : > { %2252 = vsyncadd (%p2491_p10), %s187_s24, 4294966272  ;;  %v228_v0 = vld [vmem:[%s181_s1 + $0x8] sm:$0xff]  ;;  %v227_v1 = vld [vmem:[%s181_s1] sm:$0xff]  ;;  %vm336_vm0 = vcmask 130048   ;;  %vm521_vm1 = vcmask 64512   ;;  %s213_s1 = sand.u32 1, %s2263_s10  }
  0x5a   : > { %v219_v2 = vld [vmem:[%s190_s26] sm:$0xff]  ;;  %v230_v3 = vmul.f32 0.2, %v228_v0  ;;  %v229_v4 = vmul.f32 0.2, %v227_v1  ;;  %v2553_v5 = vld [vmem:[%s190_s26 + $0x8] sm:$0xff] }
  0x5b   : > { %1884 = vmatprep.mubr.f32.mxu0 %v219_v2  ;;  %1896 = vmatprep.subr.mxu1 %v219_v2  ;;  %v225_v6 = vld [vmem:[%s190_s26 + $0x30] sm:$0xff]  ;;  %v2560_v8 = vld [vmem:[%s190_s26 + $0x18] sm:$0xff]  ;;  %v2562_v9 = vld [vmem:[%s190_s26 + $0x20] sm:$0xff]  ;;  %s1845_s29 = sshll.u32 %s2295_s18, 5  ;;  %s1820_s7 = sshll.u32 %s213_s1, 7 }
  0x5c   : > { %1897 = vmatpush3.msra.mxu1 %v219_v2  ;;  %1880 = vmatprep.subr.mxu0 %v230_v3  ;;  %v2556_v7 = vld [vmem:[%s190_s26 + $0x10] sm:$0xff]  ;;  %v2566_v10 = vld [vmem:[%s190_s26 + $0x28] sm:$0xff]  ;;  %v2569_v11 = vld [vmem:[%s190_s26 + $0x38] sm:$0xff]  ;;  %s2660_s18 = sadd.s32 %s2299_s19, %s1845_s29  ;;  %s2667_s19 = scalar_lea.vmem [#allocation7], %s1820_s7 }
  0x5d   : > { %1901 = vmatprep.subr.mxu1 %v2553_v5  ;;  %1881 = vmatpush3.xpose.msra.mxu0 %v230_v3  ;;  %s1840_s25 = sshll.u32 %s2660_s18, 7  ;;  %s1698_s8 = sshll.u32 %s2667_s19, 4  ;;  %s2689_s8 = int_to_ptr.vmem [resolvable:$true] %s1698_s8 }
  0x5e   : > { %1882 = vmatprep.subr.mxu0 %v229_v4  ;;  %s2687_s0 = scalar_lea.hbm %s2778_s2, %s1840_s25  ;;  %s2701_s27 = scalar_lea.sflag [#allocation4], %s213_s1 }
  0x5f   : > { %s2163_s30 = scalar_lea.vmem %s2689_s8, 2048  ;;  %p2813_p8 = scmp.ne.s32.totalorder %s2805_s6, 0 }
  0x60   : > { %p2164_p7 = scmp.ne.s32.totalorder %s2689_s8, %s2163_s30  ;;  %s2319_s12 = smov [#allocation7]  }
  0x61   : > { %1883 = vmatpush3.xpose.msra.mxu0 %v229_v4  ;;  %s2167_s5 = sshll.u32 %s2319_s12, 4  ;;  %s2168_s5 = int_to_ptr.vmem [resolvable:$false] %s2167_s5 }
  0x62   : > { %1926 = vmatprep.subr.mxu0 %v225_v6  ;;  %p2165_p12 = pnand %p2164_p7, %p2813_p8  ;;  %s2169_s21 = scalar_lea.vmem %s2168_s5, 4096 }
  0x63   : > { %p2170_p11 = scmp.lt.s32.totalorder %s2689_s8, %s2168_s5  ;;  %p2171_p13 = scmp.lt.s32.totalorder %s2169_s21, %s2163_s30 }
  0x64   : > { %1885 = vmatmul.mubr.f32.vlgmr.msra.gmra.mxu0 %v2553_v5  ;;  %p2166_p10 = pneg %p2165_p12 }
  0x65   : > { %1887 = vmatprep.mubr.f32.mxu0 %v2556_v7  ;;  %1927 = vmatpush3.msra.mxu0 %v225_v6  ;;  %p2172_p2 = por %p2171_p13, %p2170_p11 }
  0x67   : > { %p2173_p0 = pnand %p2172_p2, %p2166_p10 }
  0x68   : > { %1888 = vmatmul.mubr.f32.gmra.mxu0 %v2560_v8 }
  0x69   : > { %1890 = vmatprep.mubr.f32.mxu0 %v2562_v9 }
  0x6c   : > { %1891 = vmatmul.mubr.f32.gmra.mxu0 %v2566_v10 }
  0x6d   : > { %1893 = vmatprep.mubr.f32.mxu0 %v225_v6 }
  0x70   : > { %1894 = vmatmul.mubr.f32.gmra.mxu0 %v2569_v11 }
 0x124   : > { %v1886_v12 = vpop.f32.mrf.mxu0 }
 0x125   : > { %v344_v13 = vsel %vm336_vm0, %v1886_v12, -inf }
 0x126   : > { %v345_v14 = vrot.slane %v344_v13, 4  ;;  %v297_v15 = vpop.f32.mrf.mxu0 }
 0x127   : > { %v337_v16 = vsel %vm336_vm0, %v297_v15, -inf }
 0x128   : > { %v346_v17 = vmax.f32 %v344_v13, %v345_v14  ;;  %v338_v18 = vrot.slane %v337_v16, 4  ;;  %v1889_v19 = vpop.f32.mrf.mxu0 }
 0x129   : > { %v358_v20 = vsel %vm336_vm0, %v1889_v19, -inf }
 0x12a   : > { %v347_v21 = vrot.slane %v346_v17, 2  ;;  %v339_v22 = vmax.f32 %v337_v16, %v338_v18  ;;  %v359_v23 = vrot.slane %v358_v20, 4  ;;  %v307_v24 = vpop.f32.mrf.mxu0 }
 0x12b   : > { %v351_v25 = vsel %vm336_vm0, %v307_v24, -inf }
 0x12c   : > { %v348_v26 = vmax.f32 %v346_v17, %v347_v21  ;;  %v340_v27 = vrot.slane %v339_v22, 2  ;;  %v360_v28 = vmax.f32 %v358_v20, %v359_v23  ;;  %v352_v29 = vrot.slane %v351_v25, 4  ;;  %v1892_v30 = vpop.f32.mrf.mxu0 }
 0x12d   : > { %v372_v31 = vsel %vm336_vm0, %v1892_v30, -inf }
 0x12e   : > { %v349_v32 = vrot.slane %v348_v26, 1  ;;  %v341_v33 = vmax.f32 %v339_v22, %v340_v27  ;;  %v361_v34 = vrot.slane %v360_v28, 2  ;;  %v353_v35 = vmax.f32 %v351_v25, %v352_v29  ;;  %v317_v36 = vpop.f32.mrf.mxu0 }
 0x12f   : > { %v373_v37 = vrot.slane %v372_v31, 4  ;;  %v365_v38 = vsel %vm336_vm0, %v317_v36, -inf }
 0x130   : > { %v350_v39 = vmax.f32 %v348_v26, %v349_v32  ;;  %v342_v40 = vrot.slane %v341_v33, 1  ;;  %v362_v41 = vmax.f32 %v360_v28, %v361_v34  ;;  %v354_v42 = vrot.slane %v353_v35, 2  ;;  %v1895_v43 = vpop.f32.mrf.mxu0 }
 0x131   : > { %v374_v44 = vmax.f32 %v372_v31, %v373_v37  ;;  %v366_v45 = vrot.slane %v365_v38, 4  ;;  %v386_v46 = vsel %vm336_vm0, %v1895_v43, -inf }
 0x132   : > { %v394_v47 = vsub.f32 %v1886_v12, %v350_v39  ;;  %v343_v48 = vmax.f32 %v341_v33, %v342_v40  ;;  %v363_v49 = vrot.slane %v362_v41, 1  ;;  %v355_v50 = vmax.f32 %v353_v35, %v354_v42  ;;  %v327_v51 = vpop.f32.mrf.mxu0 }
 0x133   : > { %v375_v52 = vrot.slane %v374_v44, 2  ;;  %v367_v53 = vmax.f32 %v365_v38, %v366_v45  ;;  %v387_v54 = vrot.slane %v386_v46, 4  ;;  %v379_v55 = vsel %vm336_vm0, %v327_v51, -inf }
 0x134   : > { %v403_v56 = vmul.f32 1.442695, %v394_v47  ;;  %v393_v57 = vsub.f32 %v297_v15, %v343_v48  ;;  %v364_v58 = vmax.f32 %v362_v41, %v363_v49  ;;  %v356_v59 = vrot.slane %v355_v50, 1 }
 0x135   : > { %v376_v60 = vmax.f32 %v374_v44, %v375_v52  ;;  %v368_v61 = vrot.slane %v367_v53, 2  ;;  %v388_v62 = vmax.f32 %v386_v46, %v387_v54  ;;  %v380_v63 = vrot.slane %v379_v55, 4 }
 0x136   : > { %2075 = vpow2.f32 %v403_v56  ;;  %v401_v0 = vmul.f32 1.442695, %v393_v57  ;;  %v396_v1 = vsub.f32 %v1889_v19, %v364_v58  ;;  %v357_v2 = vmax.f32 %v355_v50, %v356_v59 }
 0x137   : > { %v377_v3 = vrot.slane %v376_v60, 1  ;;  %v369_v4 = vmax.f32 %v367_v53, %v368_v61  ;;  %v389_v6 = vrot.slane %v388_v62, 2  ;;  %v381_v12 = vmax.f32 %v379_v55, %v380_v63 }
 0x138   : > { %2077 = vpow2.f32 %v401_v0  ;;  %v407_v13 = vmul.f32 1.442695, %v396_v1  ;;  %v395_v14 = vsub.f32 %v307_v24, %v357_v2 }
 0x139   : > { %v378_v16 = vmax.f32 %v376_v60, %v377_v3  ;;  %v370_v17 = vrot.slane %v369_v4, 1  ;;  %v390_v15 = vmax.f32 %v388_v62, %v389_v6  ;;  %v382_v18 = vrot.slane %v381_v12, 2 }
 0x13a   : > { %2079 = vpow2.f32 %v407_v13  ;;  %v405_v20 = vmul.f32 1.442695, %v395_v14 }
 0x13b   : > { %v398_v21 = vsub.f32 %v1892_v30, %v378_v16  ;;  %v371_v22 = vmax.f32 %v369_v4, %v370_v17  ;;  %v391_v23 = vrot.slane %v390_v15, 1  ;;  %v383_v25 = vmax.f32 %v381_v12, %v382_v18 }
 0x13c   : > { %2081 = vpow2.f32 %v405_v20 }
 0x13d   : > { %v411_v19 = vmul.f32 1.442695, %v398_v21  ;;  %v397_v26 = vsub.f32 %v317_v36, %v371_v22  ;;  %v392_v27 = vmax.f32 %v390_v15, %v391_v23  ;;  %v384_v28 = vrot.slane %v383_v25, 1 }
 0x13f   : > { %2083 = vpow2.f32 %v411_v19  ;;  %v409_v29 = vmul.f32 1.442695, %v397_v26  ;;  %v400_v31 = vsub.f32 %v1895_v43, %v392_v27  ;;  %v385_v32 = vmax.f32 %v383_v25, %v384_v28 }
 0x141   : > { %2085 = vpow2.f32 %v409_v29  ;;  %v415_v24 = vmul.f32 1.442695, %v400_v31  ;;  %v399_v33 = vsub.f32 %v327_v51, %v385_v32 }
 0x143   : > { %v2580_v34 = vpop.eup %2075  ;;  %2087 = vpow2.f32 %v415_v24  ;;  %v413_v35 = vmul.f32 1.442695, %v399_v33 }
 0x144   : > { %v424_v30 = vsel %vm336_vm0, %v2580_v34, 0.0 }
 0x145   : > { %v2584_v37 = vpop.eup %2077  ;;  %v425_v38 = vrot.slane %v424_v30, 4  ;;  %2089 = vpow2.f32 %v413_v35 }
 0x146   : > { %v417_v36 = vsel %vm336_vm0, %v2584_v37, 0.0 }
 0x147   : > { %v2588_v39 = vpop.eup %2079  ;;  %v426_v40 = vadd.f32 %v425_v38, %v424_v30  ;;  %v418_v41 = vrot.slane %v417_v36, 4 }
 0x148   : > { %v438_v42 = vsel %vm336_vm0, %v2588_v39, 0.0 }
 0x149   : > { %v2592_v43 = vpop.eup %2081  ;;  %v427_v44 = vrot.slane %v426_v40, 2  ;;  %v419_v45 = vadd.f32 %v418_v41, %v417_v36  ;;  %v439_v46 = vrot.slane %v438_v42, 4 }
 0x14a   : > { %v431_v47 = vsel %vm336_vm0, %v2592_v43, 0.0 }
 0x14b   : > { %v440_v48 = vadd.f32 %v439_v46, %v438_v42  ;;  %v432_v49 = vrot.slane %v431_v47, 4  ;;  %v420_v50 = vrot.slane %v419_v45, 2  ;;  %v428_v51 = vadd.f32 %v427_v44, %v426_v40 }
 0x14c   : > { %v2596_v52 = vpop.eup %2083 }
 0x14d   : > { %v441_v53 = vrot.slane %v440_v48, 2  ;;  %v433_v54 = vadd.f32 %v432_v49, %v431_v47  ;;  %v452_v55 = vsel %vm336_vm0, %v2596_v52, 0.0  ;;  %v421_v56 = vadd.f32 %v420_v50, %v419_v45 }
 0x14e   : > { %v2086_v57 = vpop.eup %2085  ;;  %v453_v58 = vrot.slane %v452_v55, 4  ;;  %v429_v59 = vrot.slane %v428_v51, 1 }
 0x14f   : > { %v445_v60 = vsel %vm336_vm0, %v2086_v57, 0.0  ;;  %v422_v61 = vrot.slane %v421_v56, 1  ;;  %v434_v62 = vrot.slane %v433_v54, 2  ;;  %v442_v63 = vadd.f32 %v441_v53, %v440_v48 }
 0x150   : > { %v2601_v0 = vpop.eup %2087  ;;  %v454_v1 = vadd.f32 %v453_v58, %v452_v55  ;;  %v446_v2 = vrot.slane %v445_v60, 4  ;;  %v430_v12 = vadd.f32 %v429_v59, %v428_v51 }
 0x151   : > { %v466_v3 = vsel %vm336_vm0, %v2601_v0, 0.0  ;;  %v423_v4 = vadd.f32 %v422_v61, %v421_v56  ;;  %v435_v6 = vadd.f32 %v434_v62, %v433_v54  ;;  %v443_v15 = vrot.slane %v442_v63, 1 }
 0x152   : > { %v2090_v13 = vpop.eup %2089  ;;  %v455_v14 = vrot.slane %v454_v1, 2  ;;  %v447_v16 = vadd.f32 %v446_v2, %v445_v60  ;;  %v467_v17 = vrot.slane %v466_v3, 4 }
 0x153   : > { %v459_v18 = vsel %vm336_vm0, %v2090_v13, 0.0  ;;  %2091 = vrcp.f32 %v423_v4  ;;  %v436_v20 = vrot.slane %v435_v6, 1  ;;  %v444_v28 = vadd.f32 %v443_v15, %v442_v63 }
 0x154   : > { %v448_v21 = vrot.slane %v447_v16, 2  ;;  %v468_v22 = vadd.f32 %v467_v17, %v466_v3  ;;  %v460_v23 = vrot.slane %v459_v18, 4  ;;  %v456_v25 = vadd.f32 %v455_v14, %v454_v1 }
 0x155   : > { %v437_v19 = vadd.f32 %v436_v20, %v435_v6  ;;  %2093 = vrcp.f32 %v430_v12 }
 0x156   : > { %v469_v26 = vrot.slane %v468_v22, 2  ;;  %v461_v27 = vadd.f32 %v460_v23, %v459_v18  ;;  %v449_v29 = vadd.f32 %v448_v21, %v447_v16  ;;  %v457_v31 = vrot.slane %v456_v25, 1 }
 0x157   : > { %2095 = vrcp.f32 %v437_v19  ;;  %v1399_v16 = vlaneseq }
 0x158   : > { %v462_v32 = vrot.slane %v461_v27, 2  ;;  %v450_v24 = vrot.slane %v449_v29, 1  ;;  %v470_v33 = vadd.f32 %v469_v26, %v468_v22  ;;  %2097 = vrcp.f32 %v444_v28 }
 0x159   : > { %v458_v38 = vadd.f32 %v457_v31, %v456_v25  ;;  %v1400_v18 = vshrl.u32 %v1399_v16, 7  ;;  %v2318_v22 = vmov 1934713408  }
 0x15a   : > { %v451_v35 = vadd.f32 %v450_v24, %v449_v29  ;;  %v463_v30 = vadd.f32 %v462_v32, %v461_v27  ;;  %v471_v40 = vrot.slane %v470_v33, 1  ;;  %v1461_v23 = vunpack.c.l.s4 %v2318_v22 }
 0x15c   : > { %2099 = vrcp.f32 %v451_v35  ;;  %v464_v36 = vrot.slane %v463_v30, 1  ;;  %v472_v44 = vadd.f32 %v471_v40, %v470_v33  ;;  %v1462_v29 = vunpack.c.0.s8 %v1461_v23 }
 0x15d   : > { %2101 = vrcp.f32 %v458_v38 }
 0x15e   : > { %v465_v41 = vadd.f32 %v464_v36, %v463_v30 }
 0x160   : > { %v2092_v42 = vpop.eup %2091  ;;  %2103 = vrcp.f32 %v465_v41 }
 0x161   : > { %v474_v45 = vmul.f32 %v2092_v42, %v2584_v37  ;;  %2105 = vrcp.f32 %v472_v44  ;;  %v2639_v42 = vsub.s32 %v1462_v29, %v1400_v18 }
 0x162   : > { %v2094_v46 = vpop.eup %2093 }
 0x163   : > { %489 = vxpose.xlu0.b32.start.end [1/1] (short) (narrow) %v474_v45, 16  ;;  %v476_v49 = vmul.f32 %v2094_v46, %v2580_v34 }
 0x164   : > { %v2096_v47 = vpop.eup %2095 }
 0x165   : > { %v478_v48 = vmul.f32 %v2096_v47, %v2592_v43  ;;  %v2098_v50 = vpop.eup %2097 }
 0x166   : > { %v480_v53 = vmul.f32 %v2098_v50, %v2588_v39 }
 0x167   : > { %716 = vxpose.xlu1.b32.start.end [1/1] (short) (narrow) %v478_v48, 16 }
 0x168   : > { %603 = vxpose.xlu0.b32.start.end [1/1] (short) (narrow) %v476_v49, 16 }
 0x169   : > { %v2100_v51 = vpop.eup %2099 }
 0x16a   : > { %v482_v54 = vmul.f32 %v2100_v51, %v2086_v57  ;;  %v2102_v55 = vpop.eup %2101 }
 0x16b   : > { %v484_v37 = vmul.f32 %v2102_v55, %v2596_v52 }
 0x16c   : > { %829 = vxpose.xlu1.b32.start.end [1/1] (short) (narrow) %v480_v53, 16 }
 0x16d   : > { %v2104_v56 = vpop.eup %2103  ;;  %942 = vxpose.xlu0.b32.start.end [1/1] (short) (narrow) %v482_v54, 16 }
 0x16e   : > { %v486_v58 = vmul.f32 %v2104_v56, %v2090_v13  ;;  %v2106_v59 = vpop.eup %2105  ;;  %v2317_v13 = vmov 1983009808  }
 0x16f   : > { %v488_v43 = vmul.f32 %v2106_v59, %v2601_v0  ;;  %v1397_v14 = vunpack.c.l.s4 %v2317_v13 }
 0x171   : > { %1055 = vxpose.xlu1.b32.start.end [1/1] (short) (narrow) %v484_v37, 16  ;;  %v1398_v15 = vunpack.c.0.s8 %v1397_v14 }
 0x172   : > { %1168 = vxpose.xlu0.b32.start.end [1/1] (short) (narrow) %v486_v58, 16 }
 0x173   : > { %v1401_v19 = vsub.s32 %v1398_v15, %v1400_v18 }
 0x176   : > { %1281 = vxpose.xlu1.b32.start.end [1/1] (short) (narrow) %v488_v43, 16 }
 0x1df   : > { %v505_v34 = vpop.trf.xlu0 }
 0x1e0   : > { %1898 = vmatprep.mubr.msk.f32.mxu1 %vm521_vm1, %v505_v34 }
 0x1e3   : > { %v506_v60 = vpop.trf.xlu0  ;;  %v732_v39 = vpop.trf.xlu1 }
 0x1e4   : > { %1899 = vmatmul.mubr.msk.f32.vlgmr.msra.gmra.mxu1 %vm521_vm1, %v506_v60 }
 0x1e5   : > { %1902 = vmatpush3.msra.mxu1 %v2553_v5 }
 0x1e6   : > { %1906 = vmatprep.subr.mxu1 %v2556_v7 }
 0x1e7   : > { %v619_v52 = vpop.trf.xlu0  ;;  %v733_v57 = vpop.trf.xlu1 }
 0x1e8   : > { %1903 = vmatprep.mubr.msk.f32.mxu1 %vm521_vm1, %v619_v52 }
 0x1eb   : > { %v620_v61 = vpop.trf.xlu0  ;;  %v845_v62 = vpop.trf.xlu1 }
 0x1ec   : > { %1904 = vmatmul.mubr.msk.f32.vlgmr.msra.gmra.mxu1 %vm521_vm1, %v620_v61 }
 0x1ed   : > { %1907 = vmatpush3.msra.mxu1 %v2556_v7  ;;  %1908 = vmatprep.mubr.msk.f32.mxu1 %vm521_vm1, %v732_v39 }
 0x1ee   : > { %1911 = vmatprep.subr.mxu1 %v2560_v8 }
 0x1ef   : > { %v846_v63 = vpop.trf.xlu1  ;;  %v958_v0 = vpop.trf.xlu0 }
 0x1f0   : > { %1909 = vmatmul.mubr.msk.f32.vlgmr.msra.gmra.mxu1 %vm521_vm1, %v733_v57 }
 0x1f1   : > { %1912 = vmatpush3.msra.mxu1 %v2560_v8  ;;  %1913 = vmatprep.mubr.msk.f32.mxu1 %vm521_vm1, %v845_v62 }
 0x1f2   : > { %1916 = vmatprep.subr.mxu1 %v2562_v9 }
 0x1f3   : > { %v1071_v5 = vpop.trf.xlu1  ;;  %v959_v1 = vpop.trf.xlu0 }
 0x1f4   : > { %1914 = vmatmul.mubr.msk.f32.vlgmr.msra.gmra.mxu1 %vm521_vm1, %v846_v63 }
 0x1f5   : > { %1917 = vmatpush3.msra.mxu1 %v2562_v9  ;;  %1918 = vmatprep.mubr.msk.f32.mxu1 %vm521_vm1, %v958_v0 }
 0x1f6   : > { %1921 = vmatprep.subr.mxu1 %v2566_v10 }
 0x1f7   : > { %v1072_v7 = vpop.trf.xlu1  ;;  %v1184_v2 = vpop.trf.xlu0 }
 0x1f8   : > { %1919 = vmatmul.mubr.msk.f32.vlgmr.msra.gmra.mxu1 %vm521_vm1, %v959_v1  ;;  %1928 = vmatprep.mubr.msk.f32.mxu0 %vm521_vm1, %v1184_v2 }
 0x1f9   : > { %1922 = vmatpush3.msra.mxu1 %v2566_v10  ;;  %1923 = vmatprep.mubr.msk.f32.mxu1 %vm521_vm1, %v1071_v5 }
 0x1fa   : > { %1931 = vmatprep.subr.mxu1 %v2569_v11 }
 0x1fb   : > { %v1297_v8 = vpop.trf.xlu1  ;;  %v1185_v3 = vpop.trf.xlu0 }
 0x1fc   : > { %1924 = vmatmul.mubr.msk.f32.vlgmr.msra.gmra.mxu1 %vm521_vm1, %v1072_v7  ;;  %1929 = vmatmul.mubr.msk.f32.vlgmr.msra.gmra.mxu0 %vm521_vm1, %v1185_v3 }
 0x1fd   : > { %1932 = vmatpush3.msra.mxu1 %v2569_v11  ;;  %1933 = vmatprep.mubr.msk.f32.mxu1 %vm521_vm1, %v1297_v8 }
 0x1ff   : > { %v1298_v9 = vpop.trf.xlu1 }
 0x200   : > { %1934 = vmatmul.mubr.msk.f32.vlgmr.msra.gmra.mxu1 %vm521_vm1, %v1298_v9 }
 0x2a4   : > { %v1900_v4 = vpop.f32.mrf.mxu1 }
 0x2a6   : > { %v594_v6 = vpop.f32.mrf.mxu1 }
 0x2ac   : > { %v1905_v10 = vpop.f32.mrf.mxu1 }
 0x2ae   : > { %v707_v12 = vpop.f32.mrf.mxu1 }
 0x2b0   : > { %v1910_v17 = vpop.f32.mrf.mxu1 }
 0x2b1   : > { %v1530_v26 = vcombine.low %v1900_v4, %v1910_v17  ;;  %v1531_v28 = vcombine.high %v1900_v4, %v1910_v17 }
 0x2b2   : > { %v820_v20 = vpop.f32.mrf.mxu1 }
 0x2b3   : > { %v1538_v35 = vrot.slane %v1530_v26, %v1401_v19  ;;  %v1394_v30 = vcombine.low %v594_v6, %v820_v20  ;;  %v1545_v36 = vrot.slane %v1531_v28, %v1401_v19  ;;  %v1395_v40 = vcombine.high %v594_v6, %v820_v20 }
 0x2b4   : > { %v1915_v21 = vpop.f32.mrf.mxu1 }
 0x2b5   : > { %v1546_v11 = vcombine.low %v1905_v10, %v1915_v21  ;;  %v1547_v25 = vcombine.high %v1905_v10, %v1915_v21  ;;  %v1402_v51 = vrot.slane %v1394_v30, %v1401_v19  ;;  %v2641_v56 = vrot.slane %v1395_v40, %v1401_v19 }
 0x2b6   : > { %v933_v27 = vpop.f32.mrf.mxu1 }
 0x2b7   : > { %v1554_v31 = vrot.slane %v1546_v11, %v1401_v19  ;;  %v1410_v32 = vcombine.low %v707_v12, %v933_v27  ;;  %v1561_v33 = vrot.slane %v1547_v25, %v1401_v19  ;;  %v1411_v41 = vcombine.high %v707_v12, %v933_v27 }
 0x2b8   : > { %v1920_v24 = vpop.f32.mrf.mxu1 }
 0x2b9   : > { %v1594_v44 = vcombine.low %v1538_v35, %v1554_v31  ;;  %v1595_v45 = vcombine.high %v1538_v35, %v1554_v31  ;;  %v1418_v46 = vrot.slane %v1410_v32, %v1401_v19  ;;  %v1610_v49 = vcombine.low %v1545_v36, %v1561_v33 }
 0x2ba   : > { %v1046_v38 = vpop.f32.mrf.mxu1  ;;  %v1611_v50 = vcombine.high %v1545_v36, %v1561_v33  ;;  %v2643_v37 = vrot.slane %v1411_v41, %v1401_v19 }
 0x2bb   : > { %v1602_v59 = vrot.slane %v1594_v44, %v2639_v42  ;;  %v1609_v43 = vrot.slane %v1595_v45, %v2639_v42  ;;  %v1458_v34 = vcombine.low %v1402_v51, %v1418_v46  ;;  %v1459_v60 = vcombine.high %v1402_v51, %v1418_v46 }
 0x2bc   : > { %v1925_v47 = vpop.f32.mrf.mxu1  ;;  %v1930_v48 = vpop.f32.mrf.mxu0  ;;  %v1618_v52 = vrot.slane %v1610_v49, %v2639_v42  ;;  %v1625_v57 = vrot.slane %v1611_v50, %v2639_v42  ;;  %v1474_v10 = vcombine.low %v2641_v56, %v2643_v37  ;;  %v1475_v12 = vcombine.high %v2641_v56, %v2643_v37 }
 0x2bd   : > { %v1562_v53 = vcombine.low %v1920_v24, %v1930_v48  ;;  %v1563_v54 = vcombine.high %v1920_v24, %v1930_v48  ;;  %v1466_v4 = vrot.slane %v1458_v34, %v2639_v42  ;;  %v1473_v6 = vrot.slane %v1459_v60, %v2639_v42 }
 0x2be   : > { %v1159_v55 = vpop.f32.mrf.mxu1  ;;  %v1272_v58 = vpop.f32.mrf.mxu0  ;;  %v1482_v45 = vrot.slane %v1474_v10, %v2639_v42  ;;  %v1489_v46 = vrot.slane %v1475_v12, %v2639_v42 }
 0x2bf   : > { %v1570_v63 = vrot.slane %v1562_v53, %v1401_v19  ;;  %v1577_v0 = vrot.slane %v1563_v54, %v1401_v19  ;;  %v1426_v5 = vcombine.low %v1046_v38, %v1272_v58  ;;  %v1427_v1 = vcombine.high %v1046_v38, %v1272_v58 }
 0x2c0   : > { %v1935_v39 = vpop.f32.mrf.mxu1 }
 0x2c1   : > { %v1578_v61 = vcombine.low %v1925_v47, %v1935_v39  ;;  %v1579_v62 = vcombine.high %v1925_v47, %v1935_v39  ;;  %v1434_v15 = vrot.slane %v1426_v5, %v1401_v19  ;;  %v1441_v18 = vrot.slane %v1427_v1, %v1401_v19 }
 0x2c2   : > { %v1385_v7 = vpop.f32.mrf.mxu1 }
 0x2c3   : > { %v1586_v2 = vrot.slane %v1578_v61, %v1401_v19  ;;  %v1593_v8 = vrot.slane %v1579_v62, %v1401_v19  ;;  %v1442_v3 = vcombine.low %v1159_v55, %v1385_v7  ;;  %v1443_v9 = vcombine.high %v1159_v55, %v1385_v7 }
 0x2c5   : > { %v1626_v13 = vcombine.low %v1570_v63, %v1586_v2  ;;  %v1627_v14 = vcombine.high %v1570_v63, %v1586_v2  ;;  %v1642_v16 = vcombine.low %v1577_v0, %v1593_v8  ;;  %v1643_v17 = vcombine.high %v1577_v0, %v1593_v8 }
 0x2c6   : > { %v1450_v20 = vrot.slane %v1442_v3, %v1401_v19  ;;  %v1457_v21 = vrot.slane %v1443_v9, %v1401_v19 }
 0x2c7   : > { %v1634_v22 = vrot.slane %v1626_v13, %v2639_v42  ;;  %v1641_v23 = vrot.slane %v1627_v14, %v2639_v42  ;;  %v1650_v11 = vrot.slane %v1642_v16, %v2639_v42  ;;  %v1657_v25 = vrot.slane %v1643_v17, %v2639_v42 }
 0x2c8   : > { %v1490_v26 = vcombine.low %v1434_v15, %v1450_v20  ;;  %v1491_v27 = vcombine.high %v1434_v15, %v1450_v20  ;;  %v1506_v28 = vcombine.low %v1441_v18, %v1457_v21  ;;  %v1507_v29 = vcombine.high %v1441_v18, %v1457_v21 }
 0x2c9   : > { %v1658_v31 = vcombine.low %v1602_v59, %v1634_v22  ;;  %v1659_v32 = vcombine.high %v1602_v59, %v1634_v22  ;;  %v1660_v24 = vcombine.low %v1609_v43, %v1641_v23  ;;  %v1661_v33 = vcombine.high %v1609_v43, %v1641_v23 }
 0x2ca   : > { %v1662_v19 = vcombine.low %v1618_v52, %v1650_v11  ;;  %v1663_v35 = vcombine.high %v1618_v52, %v1650_v11  ;;  %v1664_v30 = vcombine.low %v1625_v57, %v1657_v25  ;;  %v1665_v38 = vcombine.high %v1625_v57, %v1657_v25 }
 0x2cb   : > { %1674 = vst [vmem:[%s2667_s19 + $0x40] sm:$0xff] %v1658_v31  ;;  %1675 = vst [vmem:[%s2667_s19 + $0x48] sm:$0xff] %v1659_v32  ;;  %v1498_v36 = vrot.slane %v1490_v26, %v2639_v42  ;;  %v1505_v40 = vrot.slane %v1491_v27, %v2639_v42  ;;  %v1514_v41 = vrot.slane %v1506_v28, %v2639_v42 }
 0x2cc   : > { %1676 = vst [vmem:[%s2667_s19 + $0x50] sm:$0xff] %v1660_v24  ;;  %1677 = vst [vmem:[%s2667_s19 + $0x58] sm:$0xff] %v1661_v33  ;;  %v1521_v44 = vrot.slane %v1507_v29, %v2639_v42 }
 0x2cd   : > { %1678 = vst [vmem:[%s2667_s19 + $0x60] sm:$0xff] %v1662_v19  ;;  %1679 = vst [vmem:[%s2667_s19 + $0x68] sm:$0xff] %v1663_v35  ;;  %v1522_v47 = vcombine.low %v1466_v4, %v1498_v36  ;;  %v1523_v48 = vcombine.high %v1466_v4, %v1498_v36  ;;  %v1524_v42 = vcombine.low %v1473_v6, %v1505_v40 }
 0x2ce   : > { %1680 = vst [vmem:[%s2667_s19 + $0x70] sm:$0xff] %v1664_v30  ;;  %1681 = vst [vmem:[%s2667_s19 + $0x78] sm:$0xff] %v1665_v38  ;;  %v1525_v49 = vcombine.high %v1473_v6, %v1505_v40  ;;  %v1526_v50 = vcombine.low %v1482_v45, %v1514_v41  ;;  %v1527_v51 = vcombine.high %v1482_v45, %v1514_v41 }
 0x2cf   : > { %v1528_v53 = vcombine.low %v1489_v46, %v1521_v44  ;;  %v1529_v54 = vcombine.high %v1489_v46, %v1521_v44  ;;  %1666 = vst [vmem:[%s2667_s19] sm:$0xff] %v1522_v47  ;;  %1667 = vst [vmem:[%s2667_s19 + $0x8] sm:$0xff] %v1523_v48 }
 0x2d0   : > { %1668 = vst [vmem:[%s2667_s19 + $0x10] sm:$0xff] %v1524_v42  ;;  %1669 = vst [vmem:[%s2667_s19 + $0x18] sm:$0xff] %v1525_v49 }
 0x2d1   : > { %1670 = vst [vmem:[%s2667_s19 + $0x20] sm:$0xff] %v1526_v50  ;;  %1671 = vst [vmem:[%s2667_s19 + $0x28] sm:$0xff] %v1527_v51 }
 0x2d2   : > { %1672 = vst [vmem:[%s2667_s19 + $0x30] sm:$0xff] %v1528_v53  ;;  %1673 = vst [vmem:[%s2667_s19 + $0x38] sm:$0xff] %v1529_v54 }
 0x2d3   : > { %2176 = shalt.err (!%p2173_p0)
}
 0x2d4   : > { %s2177_s23 = scalar_lea.hbm %s2687_s0, 2048  ;;  %s2181_s1 = scalar_lea.hbm %s2778_s2, 8192 }
 0x2d5   : > { %p2178_p1 = scmp.ne.s32.totalorder %s2687_s0, %s2177_s23  ;;  %p2182_p6 = scmp.lt.s32.totalorder %s2687_s0, %s2778_s2 }
 0x2d6   : > { %p2183_p4 = scmp.lt.s32.totalorder %s2181_s1, %s2177_s23 }
 0x2d7   : > { %p2179_p3 = pnand %p2178_p1, %p2813_p8 }
 0x2d8   : > { %p2184_p9 = por %p2183_p4, %p2182_p6 }
 0x2d9   : > { %p2180_p5 = pneg %p2179_p3 }
 0x2db   : > { %p2185_p7 = pnand %p2184_p9, %p2180_p5 }
 0x2dd   : > { %2188 = shalt.err (!%p2185_p7)
}
 0x2de   : > { %s2320_s18 = smov 128   ;;  %s2321_s25 = smov 256  }
 0x2df   : > { %s2322_s19 = smov 8  }
 0x2e0   : > { %1940 = dma.vmem_to_hbm [thread:$0]  (%p2813_p8), %s2689_s8, 2048, %s2687_s0, %s2701_s27, %s2320_s18, %s2321_s25, %s2322_s19  }
 0x2e1 PF: > { %p1954_p12 = scmp.ge.s32.totalorder %s2311_s22, 2  ;;  %s1713_s15 = sand.u32 1, %s2259_s9  }
 0x2e2   : > { %p2814_p10 = scmp.ne.s32.totalorder %s2807_s20, 0  ;;  %s1714_s3 = scalar_lea.sflag [#allocation4], %s1713_s15 }
 0x2e4   : > { %p1950_p11 = pnand %p1954_p12, %p2814_p10 }
 0x2e6   : > { %p1951_p13 = pneg %p1950_p11 }
 0x2e8   : > { %2254 = dma.done.wait (%p1951_p13), %s1714_s3, 2048  }
 0x2e9   : > { %2256 = vsyncadd (%p1951_p13), %s1714_s3, 4294965248  ;;  %s21_s22 = sadd.s32 1, %s2311_s22   ;;  %s2816_s20 = sld [smem:[#allocation14_spill]] }
 0x2ea   : > { %p2729_p2 = scmp.ge.s32.totalorder %s21_s22, 6   ;;  %s2817_s18 = sld [smem:[#allocation11_spill]] }
 0x2eb   : > { %s2818_s19 = sld [smem:[#allocation12_spill]]  ;;  %s2821_s9 = smov %s2263_s10 }
 0x2ec   : > { %s2819_s6 = sld [smem:[#allocation13_spill]]  ;;  %s2822_s10 = smov %s2267_s11 }
 0x2ed   : > { %s2820_s21 = sld [smem:[#allocation15_spill]]  ;;  %s2823_s11 = smov %s2512_s28 }
 0x2ee   : > { %s2824_s12 = smov %s2275_s13  ;;  %s2825_s13 = smov %s2279_s14 }
 0x2ef   : > { %s2826_s14 = smov %s2509_s4  ;;  %s2827_s15 = smov %s2287_s16 }
 0x2f0   : > { %s2828_s16 = smov %s2291_s17  ;;  %s2829_s17 = smov %s2816_s20 }
 0x2f1   :  { %20 = sbr.rel (!%p2729_p2) target bundleno = 15 (0xf), region = 86 }
 0x2f2   : > { %s2830_s20 = smov %s2819_s6 }
 0x2f6   :  { %1719 = vsyncpa [#allocation3], 1 }
 0x2f7   :  { %1721 = vsyncpa [#allocation3 + $0x1], 1 }
 0x2f8   :  { %1722 = vsyncpa [#allocation6], 1 }
 0x2f9   :  { %1724 = vsyncpa [#allocation6 + $0x1], 1 }
 0x2fa   :  { %1725 = vsyncpa [#allocation4], 1 }
 0x2fb   :  { %1727 = vsyncpa [#allocation4 + $0x1], 1 }

</bundles_post_ra>
